<compile_context>
chip_gen: v7x
topology: tpu7x:2x2x1
jax: 0.10.0
libtpu: 0.0.40
codegen_flags: <defaults>
</compile_context>

<pallas_src>
import jax
import jax.numpy as jnp
from jax.experimental import pallas as pl
from jax.experimental.pallas import tpu as pltpu

# ---- model hyperparameters (mirrors ConvFFNN.__init__) ----
INPUT_SIZE = 4          # args['input_size']  (conv in_channels)
HIDDEN_SIZE = 32        # args['hidden_size']
OUTPUT_SIZE = 3         # args['output_size']
SEQ_LEN = 8             # args['sequence_length']
NUM_FILTERS = 20
KERNEL_SIZE = 3
L_OUT = SEQ_LEN - KERNEL_SIZE + 1
BATCH = 2


def convffnn_kernel(p_ref, wbd_ref, bc_ref, w1_ref, b1_ref, w2_ref, b2_ref,
                    y_ref, yhat_ref, loss_ref):
    # Conv1d (+bias, ReLU) as a single matmul against the block-diagonal
    # im2col weight.  Output layout is (B, L_OUT*F) in t-major order, which
    # matches the pre-permuted Linear1 weight, so Flatten is free.
    conv = jnp.dot(p_ref[...], wbd_ref[...], preferred_element_type=jnp.float32)
    conv = jnp.maximum(conv + bc_ref[...], 0.0)

    # Linear1 + ReLU2 : one (B, 120) x (120, 32) matmul
    h1 = jnp.dot(conv, w1_ref[...], preferred_element_type=jnp.float32)
    h1 = jnp.maximum(h1 + b1_ref[...], 0.0)

    # Linear2 : one (B, 32) x (32, 3) matmul
    yhat = jnp.dot(h1, w2_ref[...], preferred_element_type=jnp.float32) + b2_ref[...]
    yhat_ref[...] = yhat                                   # single store for all B

    # MSE loss (mean over all B*OUTPUT_SIZE elements), written exactly once.
    err = yhat - y_ref[...]
    inv_n = 1.0 / (y_ref.shape[0] * y_ref.shape[1])        # static at trace time
    loss_ref[...] = (jnp.sum(err * err) * inv_n).reshape(1, 1)


def convffnn_forward(x, y, params):
    """x: (B, C, L) float32 (PyTorch NCW), y: (B, OUTPUT_SIZE)."""
    wc, bc, w1, b1, w2, b2 = (params[k] for k in ("wc", "bc", "w1", "b1", "w2", "b2"))
    B = x.shape[0]
    KC = KERNEL_SIZE * INPUT_SIZE

    # ---- one-time layout plumbing (wrapper-side XLA, never re-run per step) ----
    x_t = jnp.transpose(x, (0, 2, 1)).astype(jnp.float32)              # (B, L, C)
    # im2col patches: patches[b, t*KC + k*C + c] = x[b, c, t+k]
    patches = jnp.stack([x_t[:, k:k + L_OUT, :] for k in range(KERNEL_SIZE)],
                        axis=2).reshape(B, L_OUT * KC)                 # (B, 72)
    # block-diagonal conv weight: w_bd[t*KC + (k*C+c), t*F + f] = wc[f, c, k]
    wc_km = jnp.transpose(wc, (2, 1, 0)).astype(jnp.float32).reshape(KC, NUM_FILTERS)
    w_bd = jnp.einsum("ts,kf->tksf",
                      jnp.eye(L_OUT, dtype=jnp.float32), wc_km)
    w_bd = w_bd.reshape(L_OUT * KC, L_OUT * NUM_FILTERS)               # (72, 120)
    bc_k = jnp.tile(bc.astype(jnp.float32), L_OUT).reshape(1, L_OUT * NUM_FILTERS)
    # Linear1 weight pre-permuted so the t-major conv output matches torch Flatten
    w1_k = jnp.transpose(w1.reshape(HIDDEN_SIZE, NUM_FILTERS, L_OUT),
                         (2, 1, 0)).astype(jnp.float32).reshape(
                             L_OUT * NUM_FILTERS, HIDDEN_SIZE)         # (120, 32)
    b1_k = b1.reshape(1, HIDDEN_SIZE).astype(jnp.float32)
    w2_k = jnp.transpose(w2, (1, 0)).astype(jnp.float32)               # (32, 3)
    b2_k = b2.reshape(1, OUTPUT_SIZE).astype(jnp.float32)
    y_k = y.astype(jnp.float32)                                        # (B, 3)

    vmem = pl.BlockSpec(memory_space=pltpu.MemorySpace.VMEM)
    yhat, loss = pl.pallas_call(
        convffnn_kernel,
        out_shape=(jax.ShapeDtypeStruct((B, OUTPUT_SIZE), jnp.float32),
                   jax.ShapeDtypeStruct((1, 1), jnp.float32)),
        in_specs=[vmem] * 8,
        out_specs=(vmem, vmem),
    )(patches, w_bd, bc_k, w1_k, b1_k, w2_k, b2_k, y_k)

    return loss[0, 0], yhat


def reference_forward(x, y, params):
    """Pure-JAX reference replicating the PyTorch forward exactly."""
    wc, bc, w1, b1, w2, b2 = (params[k] for k in ("wc", "bc", "w1", "b1", "w2", "b2"))
    patches = jnp.stack([x[:, :, k:k + L_OUT] for k in range(KERNEL_SIZE)], axis=-1)
    conv = jnp.einsum("bctk,fck->bft", patches, wc) + bc[None, :, None]
    h = jnp.maximum(conv, 0.0).reshape(x.shape[0], -1)          # Flatten (B, F*L_OUT)
    h1 = jnp.maximum(h @ w1.T + b1, 0.0)
    y_hat = h1 @ w2.T + b2
    loss = jnp.mean((y_hat - y) ** 2)
    return loss, y_hat


if __name__ == "__main__":
    key = jax.random.PRNGKey(0)
    ks = jax.random.split(key, 8)
    params = {
        "wc": 0.1 * jax.random.normal(ks[0], (NUM_FILTERS, INPUT_SIZE, KERNEL_SIZE), jnp.float32),
        "bc": 0.1 * jax.random.normal(ks[1], (NUM_FILTERS,), jnp.float32),
        "w1": 0.1 * jax.random.normal(ks[2], (HIDDEN_SIZE, NUM_FILTERS * L_OUT), jnp.float32),
        "b1": 0.1 * jax.random.normal(ks[3], (HIDDEN_SIZE,), jnp.float32),
        "w2": 0.1 * jax.random.normal(ks[4], (OUTPUT_SIZE, HIDDEN_SIZE), jnp.float32),
        "b2": 0.1 * jax.random.normal(ks[5], (OUTPUT_SIZE,), jnp.float32),
    }
    x = jax.random.normal(ks[6], (BATCH, INPUT_SIZE, SEQ_LEN), jnp.float32)   # NCW like torch
    y = jax.random.normal(ks[7], (BATCH, OUTPUT_SIZE), jnp.float32)

    loss, y_hat = convffnn_forward(x, y, params)
    jax.block_until_ready((loss, y_hat))

    loss_ref, y_hat_ref = reference_forward(x, y, params)
    assert jnp.allclose(y_hat, y_hat_ref, atol=1e-4, rtol=1e-4), "y_hat mismatch"
    assert jnp.allclose(loss, loss_ref, atol=1e-5, rtol=1e-4), "loss mismatch"

    print("KERNEL_OK")
</pallas_src>

<mosaic_0001>
module attributes {stable_mosaic.version = 11 : i64} {
  func.func @convffnn_kernel(%arg0: memref<2x72xf32, #tpu.memory_space<vmem>>, %arg1: memref<72x120xf32, #tpu.memory_space<vmem>>, %arg2: memref<1x120xf32, #tpu.memory_space<vmem>>, %arg3: memref<120x32xf32, #tpu.memory_space<vmem>>, %arg4: memref<1x32xf32, #tpu.memory_space<vmem>>, %arg5: memref<32x3xf32, #tpu.memory_space<vmem>>, %arg6: memref<1x3xf32, #tpu.memory_space<vmem>>, %arg7: memref<2x3xf32, #tpu.memory_space<vmem>>, %arg8: memref<2x3xf32, #tpu.memory_space<vmem>>, %arg9: memref<1x1xf32, #tpu.memory_space<vmem>>) attributes {dimension_semantics = [], scalar_prefetch = 0 : i64, scratch_operands = 0 : i64, tpu.core_type = #tpu.core_type<tc>} {
    %c0 = arith.constant 0 : index
    %c0_0 = arith.constant 0 : index
    %0 = vector.load %arg0[%c0, %c0_0] : memref<2x72xf32, #tpu.memory_space<vmem>>, vector<2x72xf32>
    %c0_1 = arith.constant 0 : index
    %c0_2 = arith.constant 0 : index
    %1 = vector.load %arg1[%c0_1, %c0_2] : memref<72x120xf32, #tpu.memory_space<vmem>>, vector<72x120xf32>
    %cst = arith.constant dense<0.000000e+00> : vector<2x120xf32>
    %2 = tpu.matmul %0, %1, %cst {dimension_numbers = #tpu.dot_dimension_numbers<[1], [0], [0], [1], [0, 0, 1, 1], [], []>} : vector<2x72xf32>, vector<72x120xf32>, vector<2x120xf32> -> vector<2x120xf32>
    %c0_3 = arith.constant 0 : index
    %c0_4 = arith.constant 0 : index
    %3 = vector.load %arg2[%c0_3, %c0_4] : memref<1x120xf32, #tpu.memory_space<vmem>>, vector<1x120xf32>
    %4 = vector.broadcast %3 : vector<1x120xf32> to vector<2x120xf32>
    %5 = arith.addf %2, %4 : vector<2x120xf32>
    %cst_5 = arith.constant 0.000000e+00 : f32
    %6 = vector.broadcast %cst_5 : f32 to vector<2x120xf32>
    %7 = arith.maximumf %5, %6 : vector<2x120xf32>
    %c0_6 = arith.constant 0 : index
    %c0_7 = arith.constant 0 : index
    %8 = vector.load %arg3[%c0_6, %c0_7] : memref<120x32xf32, #tpu.memory_space<vmem>>, vector<120x32xf32>
    %cst_8 = arith.constant dense<0.000000e+00> : vector<2x32xf32>
    %9 = tpu.matmul %7, %8, %cst_8 {dimension_numbers = #tpu.dot_dimension_numbers<[1], [0], [0], [1], [0, 0, 1, 1], [], []>} : vector<2x120xf32>, vector<120x32xf32>, vector<2x32xf32> -> vector<2x32xf32>
    %c0_9 = arith.constant 0 : index
    %c0_10 = arith.constant 0 : index
    %10 = vector.load %arg4[%c0_9, %c0_10] : memref<1x32xf32, #tpu.memory_space<vmem>>, vector<1x32xf32>
    %11 = vector.broadcast %10 : vector<1x32xf32> to vector<2x32xf32>
    %12 = arith.addf %9, %11 : vector<2x32xf32>
    %cst_11 = arith.constant 0.000000e+00 : f32
    %13 = vector.broadcast %cst_11 : f32 to vector<2x32xf32>
    %14 = arith.maximumf %12, %13 : vector<2x32xf32>
    %c0_12 = arith.constant 0 : index
    %c0_13 = arith.constant 0 : index
    %15 = vector.load %arg5[%c0_12, %c0_13] : memref<32x3xf32, #tpu.memory_space<vmem>>, vector<32x3xf32>
    %cst_14 = arith.constant dense<0.000000e+00> : vector<2x3xf32>
    %16 = tpu.matmul %14, %15, %cst_14 {dimension_numbers = #tpu.dot_dimension_numbers<[1], [0], [0], [1], [0, 0, 1, 1], [], []>} : vector<2x32xf32>, vector<32x3xf32>, vector<2x3xf32> -> vector<2x3xf32>
    %c0_15 = arith.constant 0 : index
    %c0_16 = arith.constant 0 : index
    %17 = vector.load %arg6[%c0_15, %c0_16] : memref<1x3xf32, #tpu.memory_space<vmem>>, vector<1x3xf32>
    %18 = vector.broadcast %17 : vector<1x3xf32> to vector<2x3xf32>
    %19 = arith.addf %16, %18 : vector<2x3xf32>
    %c0_17 = arith.constant 0 : index
    %c0_18 = arith.constant 0 : index
    %20 = vector.load %arg8[%c0_17, %c0_18] : memref<2x3xf32, #tpu.memory_space<vmem>>, vector<2x3xf32>
    tpu.vector_store %arg8[%c0_17, %c0_18], %19 {strides = array<i32>} : memref<2x3xf32, #tpu.memory_space<vmem>>, vector<2x3xf32>,
    %c0_19 = arith.constant 0 : index
    %c0_20 = arith.constant 0 : index
    %21 = vector.load %arg7[%c0_19, %c0_20] : memref<2x3xf32, #tpu.memory_space<vmem>>, vector<2x3xf32>
    %22 = arith.subf %19, %21 : vector<2x3xf32>
    %23 = arith.mulf %22, %22 : vector<2x3xf32>
    %24 = vector.shape_cast %23 : vector<2x3xf32> to vector<1x2x3xf32>
    %cst_21 = arith.constant dense<0.000000e+00> : vector<1xf32>
    %25 = vector.multi_reduction <add>, %24, %cst_21 [1, 2] : vector<1x2x3xf32> to vector<1xf32>
    %26 = vector.shape_cast %25 : vector<1xf32> to vector<1x1x1xf32>
    %27 = vector.extract %26[0, 0, 0] : f32 from vector<1x1x1xf32>
    %cst_22 = arith.constant 0.166666672 : f32
    %28 = arith.mulf %27, %cst_22 : f32
    %29 = vector.broadcast %28 : f32 to vector<1x1xf32>
    %c0_23 = arith.constant 0 : index
    %c0_24 = arith.constant 0 : index
    %30 = vector.load %arg9[%c0_23, %c0_24] : memref<1x1xf32, #tpu.memory_space<vmem>>, vector<1x1xf32>
    tpu.vector_store %arg9[%c0_23, %c0_24], %29 {strides = array<i32>} : memref<1x1xf32, #tpu.memory_space<vmem>>, vector<1x1xf32>,
    return
  }
}

</mosaic_0001>

<bundles_post_ra>
// kernel: tpu_custom_call.1
= control target key start
LH: loop header
LB: loop body
LE: loop exit
PB: predicated region body
PF: predicated region fallthrough
CT: control target
= control target key end

     0   :  { %15 = vsyncpa [#allocation3], 0  ;;  %v550_v3 = vmov 0.0|0.0   ;;  %vm551_vm0 = vmmov 0   ;;  %v552_v6 = vmov 0.0   ;;  %s744_s0 = inlined_call_operand.vmem [shape: f32[2,72], index: 0, kind: input, shape index: {}]   ;;  %s745_s1 = inlined_call_operand.vmem [shape: f32[72,120], index: 1, kind: input, shape index: {}]   ;;  %s746_s2 = inlined_call_operand.vmem [shape: f32[1,120], index: 2, kind: input, shape index: {}]   ;;  %s747_s3 = inlined_call_operand.vmem [shape: f32[120,32], index: 3, kind: input, shape index: {}]   ;;  %s748_s4 = inlined_call_operand.vmem [shape: f32[1,32], index: 4, kind: input, shape index: {}]   ;;  %s749_s5 = inlined_call_operand.vmem [shape: f32[32,3], index: 5, kind: input, shape index: {}]   ;;  %s750_s6 = inlined_call_operand.vmem [shape: f32[1,3], index: 6, kind: input, shape index: {}]   ;;  %s751_s7 = inlined_call_operand.vmem [shape: f32[2,3], index: 7, kind: input, shape index: {}]   ;;  %s752_s8 = inlined_call_operand.hbm [shape: f32[2,3], index: 8, kind: output, shape index: {0}]   ;;  %s753_s9 = inlined_call_operand.hbm [shape: f32[1,1], index: 9, kind: output, shape index: {1}]  }
   0x1   :  { %v34_v0 = vld [vmem:[%s745_s1] sm:$0xff]  ;;  %v35_v1 = vld [vmem:[%s745_s1 + $0x8] sm:$0xff]  ;;  %v36_v2 = vld [vmem:[%s745_s1 + $0x10] sm:$0xff]  ;;  %456 = vmatprep.subr.bf16.mxu0 %v550_v3  ;;  %409 = vmatprep.mubr.msk.f32.mxu0 %vm551_vm0, %v552_v6 }
   0x2   :  { %v457_v4 = vpack.c.bf16 %v35_v1, %v34_v0  ;;  %v37_v5 = vld [vmem:[%s745_s1 + $0x18] sm:$0xff]  ;;  %468 = vmatprep.subr.bf16.mxu1 %v550_v3  ;;  %442 = vmatprep.mubr.msk.f32.mxu1 %vm551_vm0, %v552_v6  ;;  %v38_v8 = vld [vmem:[%s745_s1 + $0x20] sm:$0xff]  ;;  %v126_v10 = vld [vmem:[%s747_s3 + $0x8] sm:$0xff] }
   0x3   :  { %v460_v7 = vpack.c.bf16 %v37_v5, %v36_v2  ;;  %v125_v9 = vld [vmem:[%s747_s3] sm:$0xff]  ;;  %v39_v11 = vld [vmem:[%s745_s1 + $0x28] sm:$0xff]  ;;  %v127_v13 = vld [vmem:[%s747_s3 + $0x10] sm:$0xff] }
   0x4   :  { %458 = vmatpush3.bf16.msra.mxu0 %v457_v4  ;;  %v469_v12 = vpack.c.bf16 %v126_v10, %v125_v9  ;;  %v128_v14 = vld [vmem:[%s747_s3 + $0x18] sm:$0xff]  ;;  %v463_v16 = vpack.c.bf16 %v39_v11, %v38_v8  ;;  %v129_v17 = vld [vmem:[%s747_s3 + $0x20] sm:$0xff]  ;;  %v130_v18 = vld [vmem:[%s747_s3 + $0x28] sm:$0xff] }
   0x5   :  { %459 = vmatprep.subr.bf16.mxu0 %v550_v3  ;;  %v472_v15 = vpack.c.bf16 %v128_v14, %v127_v13 }
   0x6   :  { %470 = vmatpush3.bf16.msra.mxu1 %v469_v12 }
   0x7   :  { %471 = vmatprep.subr.bf16.mxu1 %v550_v3 }
   0x8   :  { %461 = vmatpush3.bf16.msra.mxu0 %v460_v7 }
   0x9   :  { %16 = vsyncpa [#allocation5], 0  ;;  %462 = vmatprep.subr.bf16.mxu0 %v550_v3  ;;  %v40_v19 = vld [vmem:[%s745_s1 + $0x30] sm:$0xff]  ;;  %v41_v20 = vld [vmem:[%s745_s1 + $0x38] sm:$0xff]  ;;  %v475_v21 = vpack.c.bf16 %v130_v18, %v129_v17  ;;  %vm50_vm1 = vcmask 588800   ;;  %vm147_vm2 = vcmask 982016  }
   0xa   :  { %473 = vmatpush3.bf16.msra.mxu1 %v472_v15  ;;  %v466_v22 = vpack.c.bf16 %v41_v20, %v40_v19  ;;  %v131_v23 = vld [vmem:[%s747_s3 + $0x30] sm:$0xff]  ;;  %v132_v24 = vld [vmem:[%s747_s3 + $0x38] sm:$0xff]  ;;  %v133_v26 = vld [vmem:[%s747_s3 + $0x40] sm:$0xff]  ;;  %vm233_vm3 = vcmask 261120   ;;  %vm307_vm4 = vcmask 17408  }
   0xb   :  { %474 = vmatprep.subr.bf16.mxu1 %v550_v3  ;;  %v478_v25 = vpack.c.bf16 %v132_v24, %v131_v23  ;;  %v134_v27 = vld [vmem:[%s747_s3 + $0x48] sm:$0xff]  ;;  %v42_v28 = vld [vmem:[%s745_s1 + $0x40] sm:$0xff]  ;;  %v135_v31 = vld [vmem:[%s747_s3 + $0x50] sm:$0xff] }
   0xc   :  { %464 = vmatpush3.bf16.msra.mxu0 %v463_v16  ;;  %v33_v29 = vld [vmem:[%s744_s0] sm:$0x3]  ;;  %v481_v30 = vpack.c.bf16 %v134_v27, %v133_v26  ;;  %v136_v32 = vld [vmem:[%s747_s3 + $0x58] sm:$0xff]  ;;  %v138_v35 = vld [vmem:[%s747_s3 + $0x68] sm:$0xff] }
   0xd   :  { %465 = vmatprep.subr.bf16.mxu0 %v550_v3  ;;  %v484_v33 = vpack.c.bf16 %v136_v32, %v135_v31  ;;  %v137_v34 = vld [vmem:[%s747_s3 + $0x60] sm:$0xff]  ;;  %v139_v37 = vld [vmem:[%s747_s3 + $0x70] sm:$0xff]  ;;  %v223_v39 = vld [vmem:[%s749_s5 + $0x8] sm:$0xff] }
   0xe   :  { %476 = vmatpush3.bf16.msra.mxu1 %v475_v21  ;;  %v487_v36 = vpack.c.bf16 %v138_v35, %v137_v34  ;;  %v222_v38 = vld [vmem:[%s749_s5] sm:$0xff]  ;;  %v224_v46 = vld [vmem:[%s749_s5 + $0x10] sm:$0xff]  ;;  %v225_v47 = vld [vmem:[%s749_s5 + $0x18] sm:$0xff] }
   0xf   :  { %477 = vmatprep.subr.bf16.mxu1 %v550_v3  ;;  %v490_v40 = vpack.c.bf16 %v223_v39, %v222_v38  ;;  %v354_v41 = vld [vmem:[%s746_s2] ss:$0 sm:$0xff]  ;;  %v493_v48 = vpack.c.bf16 %v225_v47, %v224_v46 }
  0x10   :  { %467 = vmatpush3.bf16.msra.mxu0 %v466_v22  ;;  %v356_v49 = vld [vmem:[%s748_s4] ss:$0 sm:$0xff]  ;;  %s553_s4 = smov [#allocation2]  }
  0x11   :  { %407 = vmatprep.subr.mxu0 %v552_v6  ;;  %v358_v54 = vld [vmem:[%s750_s6] ss:$0 sm:$0xff]  ;;  %s332_s28 = sshll.u32 %s553_s4, 4  ;;  %s333_s28 = int_to_ptr.vmem [resolvable:$true] %s332_s28 }
  0x12   :  { %479 = vmatpush3.bf16.msra.mxu1 %v478_v25  ;;  %v309_v56 = vld [vmem:[%s751_s7] sm:$0x3]  ;;  %s502_s29 = scalar_lea.vmem %s333_s28, 32  ;;  %p507_p1 = scmp.lt.s32.totalorder %s333_s28, %s333_s28 }
  0x13   :  { %480 = vmatprep.subr.bf16.mxu1 %v550_v3  ;;  %p503_p0 = scmp.ne.s32.totalorder %s333_s28, %s502_s29  ;;  %p508_p2 = scmp.lt.s32.totalorder %s502_s29, %s502_s29 }
  0x14   :  { %408 = vmatpush3.msra.mxu0 %v42_v28 }
  0x15   :  { %410 = vmatmul.mubr.msk.f32.vlgmr.msra.gmra.mrb[0].mxu0 %vm50_vm1, %v33_v29  ;;  %489 = vmatprep.subr.bf16.mxu0 %v550_v3  ;;  %p509_p3 = por %p508_p2, %p507_p1 }
  0x16   :  { %453 = vmatprep.mubr.msk.f32.mxu0 %vm551_vm0, %v552_v6  ;;  %482 = vmatpush3.bf16.msra.mxu1 %v481_v30 }
  0x17   :  { %483 = vmatprep.subr.bf16.mxu1 %v550_v3  ;;  %491 = vmatpush3.bf16.msra.mxu0 %v490_v40  ;;  %p510_p4 = pnand %p509_p3, %p503_p0 }
  0x18   :  { %492 = vmatprep.subr.bf16.mxu0 %v550_v3 }
  0x1a   :  { %485 = vmatpush3.bf16.msra.mxu1 %v484_v33 }
  0x1b   :  { %486 = vmatprep.subr.bf16.mxu1 %v550_v3  ;;  %494 = vmatpush3.bf16.msra.mxu0 %v493_v48 }
  0x1e   :  { %488 = vmatpush3.bf16.msra.mxu1 %v487_v36 }
  0x1f   :  { %440 = vmatprep.subr.mxu1 %v552_v6 }
  0x22   :  { %441 = vmatpush3.msra.mxu1 %v139_v37 }
  0xe8   :  { %v120_v42 = vpop.f32.mrb[0].mxu0 }
  0xe9   :  { %v121_v43 = vadd.f32 %v354_v41, %v120_v42  ;;  %v411_v44 = vpop.f32.mrb[1].mxu0 }
  0xeb   :  { %v124_v45 = vmax.f32 %v121_v43, 0.0 }
  0xed   :  { %443 = vmatmul.mubr.msk.f32.vlgmr.msra.gmra.mrb[0].mxu1 %vm147_vm2, %v124_v45 }
 0x1c0   :  { %v217_v50 = vpop.f32.mrb[0].mxu1 }
 0x1c1   :  { %v218_v51 = vadd.f32 %v356_v49, %v217_v50  ;;  %v444_v52 = vpop.f32.mrb[1].mxu1 }
 0x1c3   :  { %v221_v53 = vmax.f32 %v218_v51, 0.0 }
 0x1c5   :  { %454 = vmatmul.mubr.msk.f32.vlgmr.msra.gmra.mrb[2].mxu0 %vm233_vm3, %v221_v53 }
 0x298   :  { %v303_v55 = vpop.f32.mrb[2].mxu0 }
 0x299   :  { %v304_v57 = vadd.f32 %v358_v54, %v303_v55  ;;  %v455_v58 = vpop.f32.mrb[3].mxu0 }
 0x29b   :  { %v310_v59 = vsub.f32 %v304_v57, %v309_v56  ;;  %308 = vst.msk [vmem:[#allocation2] sm:$0x3] %vm307_vm4, %v304_v57 }
 0x29d   :  { %v311_v60 = vmul.f32 %v310_v59, %v310_v59 }
 0x29f   :  { %v312_v61 = vsel %vm307_vm4, %v311_v60, 0.0 }
 0x2a0   :  { %313 = vadd.xlane.f32.xlu0 %v312_v61 }
 0x2a1   :  { %513 = shalt.err (!%p510_p4)
}
 0x2a2   :  { %s514_s7 = scalar_lea.hbm %s752_s8, 32 }
 0x2a3   :  { %p515_p5 = scmp.ne.s32.totalorder %s752_s8, %s514_s7  ;;  %p518_p6 = scmp.lt.u32.totalorder %s514_s7, %s752_s8 }
 0x2a5   :  { %p520_p7 = pnand %p518_p6, %p515_p5 }
 0x2a7   :  { %523 = shalt.err (!%p520_p7)
}
 0x2a8   :  { %335 = dma.vmem_to_hbm [thread:$0]  %s333_s28, 32, %s752_s8, [#allocation3]   ;;  %vm324_vm5 = vcmask 0  }
 0x2a9   :  { %s554_s14 = smov [#allocation4]  }
 0x2aa   :  { %s342_s15 = sshll.u32 %s554_s14, 4  ;;  %s343_s15 = int_to_ptr.vmem [resolvable:$true] %s342_s15 }
 0x2ab   :  { %s524_s18 = scalar_lea.vmem %s343_s15, 16  ;;  %s528_s19 = scalar_lea.vmem %s343_s15, 32 }
 0x2ac   :  { %p525_p8 = scmp.ne.s32.totalorder %s343_s15, %s524_s18  ;;  %p529_p9 = scmp.lt.s32.totalorder %s343_s15, %s343_s15 }
 0x2ad   :  { %p530_p10 = scmp.lt.s32.totalorder %s528_s19, %s524_s18 }
 0x2af   :  { %p531_p11 = por %p530_p10, %p529_p9 }
 0x2b1   :  { %p532_p12 = pnand %p531_p11, %p525_p8 }
 0x32d   :  { %v314_v62 = vpop.xlane.xlu0 %313 }
 0x32e   :  { %v315_v63 = vrot.slane %v314_v62, 4 }
 0x330   :  { %v316_v0 = vadd.f32 %v315_v63, %v314_v62 }
 0x332   :  { %v317_v1 = vrot.slane %v316_v0, 2 }
 0x334   :  { %v318_v2 = vadd.f32 %v317_v1, %v316_v0 }
 0x336   :  { %v319_v3 = vrot.slane %v318_v2, 1 }
 0x338   :  { %v320_v4 = vadd.f32 %v319_v3, %v318_v2 }
 0x33a   :  { %495 = vpush %v320_v4 }
 0x36b   :  { %s496_s16 = spop %495 }
 0x36c   :  { %s322_s17 = smul.f32 0.16666667, %s496_s16 }
 0x36e   :  { %v323_v5 = vstv %s322_s17 }
 0x36f   :  { %325 = vst.msk [vmem:[#allocation4] sm:$0x1] %vm324_vm5, %v323_v5 }
 0x370   :  { %535 = shalt.err (!%p532_p12)
}
 0x371   :  { %s536_s3 = scalar_lea.hbm %s753_s9, 16 }
 0x372   :  { %p537_p13 = scmp.ne.s32.totalorder %s753_s9, %s536_s3  ;;  %p540_p0 = scmp.lt.u32.totalorder %s536_s3, %s753_s9 }
 0x374   :  { %p542_p1 = pnand %p540_p0, %p537_p13 }
 0x376   :  { %545 = shalt.err (!%p542_p1)
}
 0x377   :  { %345 = dma.vmem_to_hbm [thread:$0]  %s343_s15, 16, %s753_s9, [#allocation5]  }
 0x378   :  { %546 = dma.done.wait [#allocation3], 32  }
 0x379   :  { %547 = vsyncadd [#allocation3], 4294967264 }
 0x37a   :  { %548 = dma.done.wait [#allocation5], 16  }
 0x37b   :  { %549 = vsyncadd [#allocation5], 4294967280 }
 0x37c   :  { %352 = vsyncpa [#allocation3], 1 }
 0x37d   :  { %353 = vsyncpa [#allocation5], 1 }

</bundles_post_ra>
